<compile_context>
chip_gen: v6e
topology: v6e:2x2x1
jax: 0.10.0
libtpu: 0.0.40
codegen_flags: <defaults>
</compile_context>

<pallas_src>
import numpy as np
import jax
import jax.numpy as jnp
from jax.experimental import pallas as pl
from jax.experimental.pallas import tpu as pltpu

RESIZE = 299
POOL = 8
FEAT_DIM = 32     # real feature width of the synthetic encoder
FEAT_PAD = 128    # lane-aligned padded feature width (zero-padded columns)
_TK_MAX = 4096    # encoder K-tile cap (keeps per-step VMEM ~10 MiB at tm=256)


# --------------------------------------------------------------------------------------
# Static interpolation / pooling matrices (numpy, depend only on static shapes)
# --------------------------------------------------------------------------------------
def bilinear_matrix(out_size, in_size, align_corners):
    """1-D bilinear interpolation matrix R (out_size, in_size): y = R @ x."""
    if in_size == out_size:
        return np.eye(out_size, dtype=np.float32)
    m = np.zeros((out_size, in_size), np.float32)
    for i in range(out_size):
        if align_corners:
            src = i * (in_size - 1) / (out_size - 1) if out_size > 1 else 0.0
        else:
            src = (i + 0.5) * in_size / out_size - 0.5
            src = min(max(src, 0.0), in_size - 1)
        lo = int(np.floor(src))
        lo = min(max(lo, 0), in_size - 1)
        hi = min(lo + 1, in_size - 1)
        w = src - lo
        m[i, lo] += 1.0 - w
        m[i, hi] += w
    return m


def avg_pool_matrix(out_size, in_size):
    """Adaptive average-pooling matrix P (out_size, in_size)."""
    m = np.zeros((out_size, in_size), np.float32)
    for k in range(out_size):
        start = (k * in_size) // out_size
        end = ((k + 1) * in_size) // out_size
        m[k, start:end] = 1.0 / (end - start)
    return m


def _fused_pool_resize_matrices(h, w):
    """A (8, H), B (8, W) such that pool8(resize299(img)) == A @ img @ B.T exactly."""
    if h < RESIZE:      # nn.Upsample(size=299, mode='bilinear', align_corners=True)
        rh = bilinear_matrix(RESIZE, h, align_corners=True)
        rw = bilinear_matrix(RESIZE, w, align_corners=True)
        rs_h = rs_w = RESIZE
    elif h > RESIZE:    # F.interpolate(size=299, mode='bilinear')  (align_corners=False)
        rh = bilinear_matrix(RESIZE, h, align_corners=False)
        rw = bilinear_matrix(RESIZE, w, align_corners=False)
        rs_h = rs_w = RESIZE
    else:               # dim == 299: no resize
        rh = np.eye(h, dtype=np.float32)
        rw = np.eye(w, dtype=np.float32)
        rs_h, rs_w = h, w
    a = avg_pool_matrix(POOL, rs_h) @ rh    # (8, H)  — pooling fused into resize
    b = avg_pool_matrix(POOL, rs_w) @ rw    # (8, W)
    return jnp.asarray(a), jnp.asarray(b)


def _build_encoder_weight(c, h, w, w_feat, b_feat):
    """Collapse resize(299) -> pool(8x8) -> flatten -> linear into one (C*H*W, 128) weight.

    feats[n, f] = sum_{c,i,j} x[n,c,i,j] * W_enc[(c,i,j), f]
    with W_enc[(c,i,j), f] = sum_{p,q} A[p,i] * B[q,j] * W[(c,p,q), f].
    W_enc is emitted in bf16 (full MXU rate, half the footprint); the bias and every
    downstream statistic stay f32.
    """
    a, b = _fused_pool_resize_matrices(h, w)                     # (8, H), (8, W)
    w_pad = jnp.pad(w_feat, ((0, 0), (0, FEAT_PAD - FEAT_DIM)))  # (C*64, 128)
    b_pad = jnp.pad(b_feat, ((0, 0), (0, FEAT_PAD - FEAT_DIM)))  # (1, 128)  f32
    wr = w_pad.reshape(c, POOL, POOL, FEAT_PAD)
    w_enc = jnp.einsum("pi,qj,cpqf->cijf", a, b, wr).reshape(c * h * w, FEAT_PAD)
    return w_enc.astype(jnp.bfloat16), b_pad


# --------------------------------------------------------------------------------------
# Pallas kernels
# --------------------------------------------------------------------------------------
def _encoder_kernel(x_ref, w_ref, b_ref, o_ref, acc_ref):
    # K-tiled (tm, tk) @ (tk, 128) with an f32 VMEM accumulator; bias folded into init.
    k = pl.program_id(1)

    @pl.when(k == 0)
    def _():
        acc_ref[...] = jnp.broadcast_to(b_ref[...], acc_ref.shape)

    acc_ref[...] += jnp.dot(
        x_ref[...].astype(jnp.bfloat16), w_ref[...],
        preferred_element_type=jnp.float32)

    @pl.when(k == pl.num_programs(1) - 1)
    def _():
        o_ref[...] = acc_ref[...]


def _stats_prod_kernel(ff_ref, fr_ref, muf_ref, mur_ref, trf_ref, trr_ref, prod_ref):
    # Fused: per-batch mean, feature-axis-centered covariance (N,N), its trace, and
    # sigma_fake @ sigma_real — the sigmas never leave VMEM.
    def sigma_and_stats(f, mu_ref, tr_ref):
        n = f.shape[0]
        # mu = feats.mean(0)   (padded columns are exactly zero and stay zero)
        mu_ref[...] = jnp.sum(f, axis=0, keepdims=True) * (1.0 / n)
        # covariance(x) as in the reference: center over the FEATURE axis, then
        # 1/(d-1) * xc @ xc^T -> (N, N).  Padded columns are masked out of xc.
        col = jax.lax.broadcasted_iota(jnp.int32, f.shape, 1)
        row_mean = jnp.sum(f, axis=1, keepdims=True) * (1.0 / FEAT_DIM)
        xc = jnp.where(col < FEAT_DIM, f - row_mean, 0.0)
        inv = 1.0 / (FEAT_DIM - 1)
        sigma = inv * jax.lax.dot_general(
            xc, xc, (((1,), (1,)), ((), ())), preferred_element_type=jnp.float32)
        # trace(sigma) = 1/(d-1) * sum(xc*xc)
        tr = jnp.sum(xc * xc, axis=1, keepdims=True)      # (N, 1)
        tr_ref[...] = inv * jnp.sum(tr, axis=0, keepdims=True)
        return sigma

    sig_f = sigma_and_stats(ff_ref[...], muf_ref, trf_ref)
    sig_r = sigma_and_stats(fr_ref[...], mur_ref, trr_ref)
    # TODO(synk): for large N (>~1k) tile this (N,N)x(N,N) product and the Gram
    # products with a lane-dense 2-D parallel grid instead of a single full block.
    prod_ref[...] = jnp.dot(sig_f, sig_r, preferred_element_type=jnp.float32)


# --------------------------------------------------------------------------------------
# Pallas-call wrappers
# --------------------------------------------------------------------------------------
def _pick_tm(n):
    if n <= 256:
        # Split into 2 'parallel' grid steps when cheaply possible so both v7x
        # TensorCores get work; otherwise use the full batch as one block.
        if n >= 16 and n % 16 == 0:
            return n // 2
        return n
    return 256


def _k_tiling(k):
    """Pick (tk, k_pad): prefer a 128-aligned tk <= _TK_MAX that divides k exactly."""
    if k <= _TK_MAX:
        return k, k
    for tk in range(_TK_MAX, 511, -128):
        if k % tk == 0:
            return tk, k
    # TODO(synk): no aligned divisor — pad K (costs one extra HBM pass over x).
    tk = _TK_MAX
    return tk, ((k + tk - 1) // tk) * tk


def _encode(x_flat, w_enc, b_pad):
    n, k = x_flat.shape
    dp = w_enc.shape[1]
    tm = _pick_tm(n)
    tk, k_pad = _k_tiling(k)
    if k_pad != k:
        x_flat = jnp.pad(x_flat, ((0, 0), (0, k_pad - k)))
        w_enc = jnp.pad(w_enc, ((0, k_pad - k), (0, 0)))

    # Per-step VMEM footprint (double-buffered x/out, bf16 weight, f32 accumulator).
    vmem_bytes = (2 * tm * tk * 4) + (2 * tk * dp * 2) + (tm * dp * 4) + (2 * tm * dp * 4)
    vmem_limit = max(32 * 1024 * 1024, int(vmem_bytes * 3 // 2))

    return pl.pallas_call(
        _encoder_kernel,
        out_shape=jax.ShapeDtypeStruct((n, dp), jnp.float32),
        grid=(pl.cdiv(n, tm), k_pad // tk),
        in_specs=[
            pl.BlockSpec((tm, tk), lambda i, kk: (i, kk)),
            pl.BlockSpec((tk, dp), lambda i, kk: (kk, 0)),
            pl.BlockSpec((1, dp), lambda i, kk: (0, 0)),
        ],
        out_specs=pl.BlockSpec((tm, dp), lambda i, kk: (i, 0)),
        scratch_shapes=[pltpu.VMEM((tm, dp), jnp.float32)],
        compiler_params=pltpu.CompilerParams(
            dimension_semantics=("parallel", "arbitrary"),
            vmem_limit_bytes=vmem_limit,
        ),
    )(x_flat, w_enc, b_pad)


def _stats_and_product(fake_feats, real_feats):
    n, dp = fake_feats.shape
    m = real_feats.shape[0]
    return pl.pallas_call(
        _stats_prod_kernel,
        out_shape=(
            jax.ShapeDtypeStruct((1, dp), jnp.float32),   # mu_fake
            jax.ShapeDtypeStruct((1, dp), jnp.float32),   # mu_real
            jax.ShapeDtypeStruct((1, 1), jnp.float32),    # trace(sigma_fake)
            jax.ShapeDtypeStruct((1, 1), jnp.float32),    # trace(sigma_real)
            jax.ShapeDtypeStruct((n, n), jnp.float32),    # sigma_fake @ sigma_real
        ),
        grid=(1,),
        in_specs=[
            pl.BlockSpec((n, dp), lambda i: (0, 0)),
            pl.BlockSpec((m, dp), lambda i: (0, 0)),
        ],
        out_specs=(
            pl.BlockSpec((1, dp), lambda i: (0, 0)),
            pl.BlockSpec((1, dp), lambda i: (0, 0)),
            pl.BlockSpec((1, 1), lambda i: (0, 0)),
            pl.BlockSpec((1, 1), lambda i: (0, 0)),
            pl.BlockSpec((n, n), lambda i: (0, 0)),
        ),
    )(fake_feats, real_feats)


def _sqrtm_trace(prod):
    """trace(sqrtm(A)) following the reference (symeig lower + cutoff), without ever
    reconstructing the (N,N) square root: trace(V diag(d) V^T) = sum(V*V*d)."""
    a_sym = jnp.tril(prod) + jnp.tril(prod, -1).T
    p, v = jnp.linalg.eigh(a_sym)   # TODO(synk): eigendecomposition has no Pallas equivalent
    cond = 1e-6                     # float32 cutoff from the reference
    cutoff = jnp.abs(p) > cond * jnp.max(jnp.abs(p))
    d = jnp.where(cutoff, jnp.sqrt(jnp.where(cutoff, p, 1.0)), 0.0)
    return jnp.sum((v * v) * d[None, :])


def frechet_inception_distance(x, y, w_feat, b_feat):
    """Forward pass of FrechetInceptionDistance (synthetic linear encoder)."""
    assert x.ndim == 4 and y.ndim == 4
    nx, cx, hx, wx = x.shape
    ny, cy, hy, wy = y.shape
    assert nx == ny, "sigma_fake @ sigma_real requires matching batch sizes"

    if x.shape[1:] == y.shape[1:]:
        # Reuse one fused encoder weight; two calls -> no HBM concat of the images.
        w_enc, b_pad = _build_encoder_weight(cx, hx, wx, w_feat, b_feat)
        fake_feats = _encode(x.reshape(nx, -1), w_enc, b_pad)
        real_feats = _encode(y.reshape(ny, -1), w_enc, b_pad)
    else:
        w_enc_x, b_pad = _build_encoder_weight(cx, hx, wx, w_feat, b_feat)
        w_enc_y, _ = _build_encoder_weight(cy, hy, wy, w_feat, b_feat)
        fake_feats = _encode(x.reshape(nx, -1), w_enc_x, b_pad)
        real_feats = _encode(y.reshape(ny, -1), w_enc_y, b_pad)

    mu_fake, mu_real, tr_fake, tr_real, prod = _stats_and_product(fake_feats, real_feats)

    # Tiny scalar tail: eigh epilogue + final combination stay in plain JAX (a dedicated
    # Pallas launch plus HBM round-trip would cost more than the compute).
    tr_sqrt = _sqrtm_trace(prod)
    dmu = (mu_fake - mu_real)[0]                       # (128,), padded columns cancel
    fd = jnp.dot(dmu, dmu) + tr_fake[0, 0] + tr_real[0, 0] - 2.0 * tr_sqrt
    return fd


# --------------------------------------------------------------------------------------
if __name__ == "__main__":
    key = jax.random.PRNGKey(0)
    kx, ky, kw, kb = jax.random.split(key, 4)

    # Small NCHW images (dim < 299 -> upsample branch), 3 channels like inception input.
    x = jax.random.normal(kx, (2, 3, 16, 16), dtype=jnp.float32)
    y = jax.random.normal(ky, (2, 3, 16, 16), dtype=jnp.float32)

    # Deterministic synthetic-encoder parameters (flatten dim = 3 * 8 * 8 = 192).
    w_feat = 0.05 * jax.random.normal(kw, (3 * POOL * POOL, FEAT_DIM), dtype=jnp.float32)
    b_feat = 0.01 * jax.random.normal(kb, (1, FEAT_DIM), dtype=jnp.float32)

    fid_fn = jax.jit(frechet_inception_distance)
    fd = fid_fn(x, y, w_feat, b_feat)
    jax.block_until_ready(fd)
    print("KERNEL_OK")
</pallas_src>

<mosaic_0001>
module attributes {stable_mosaic.version = 11 : i64} {
  func.func @_encoder_kernel(%arg0: i32, %arg1: i32, %arg2: memref<2x768xf32, #tpu.memory_space<vmem>>, %arg3: memref<768x128xbf16, #tpu.memory_space<vmem>>, %arg4: memref<1x128xf32, #tpu.memory_space<vmem>>, %arg5: memref<2x128xf32, #tpu.memory_space<vmem>>, %arg6: memref<2x128xf32, #tpu.memory_space<vmem>>) attributes {dimension_semantics = [#tpu.dimension_semantics<parallel>, #tpu.dimension_semantics<arbitrary>], iteration_bounds = array<i64: 1, 1>, scalar_prefetch = 0 : i64, scratch_operands = 1 : i64, tpu.core_type = #tpu.core_type<tc>, window_params = [{transform_indices = @transform_0, window_bounds = array<i64: 2, 768>}, {transform_indices = @transform_1, window_bounds = array<i64: 768, 128>}, {pipeline_mode = #tpu.pipeline_mode<synchronous>, transform_indices = @transform_2, window_bounds = array<i64: 1, 128>}, {transform_indices = @transform_3, window_bounds = array<i64: 2, 128>}]} {
    %c0_i32 = arith.constant 0 : i32
    %0 = arith.cmpi eq, %arg1, %c0_i32 : i32
    %1 = arith.extui %0 : i1 to i32
    %c0_i32_0 = arith.constant 0 : i32
    %2 = arith.cmpi ne, %1, %c0_i32_0 : i32
    scf.if %2 {
      %c0_10 = arith.constant 0 : index
      %c0_11 = arith.constant 0 : index
      %13 = vector.load %arg4[%c0_10, %c0_11] : memref<1x128xf32, #tpu.memory_space<vmem>>, vector<1x128xf32>
      %14 = vector.shape_cast %13 : vector<1x128xf32> to vector<1x128xf32>
      %15 = vector.broadcast %14 : vector<1x128xf32> to vector<2x128xf32>
      %c0_12 = arith.constant 0 : index
      %c0_13 = arith.constant 0 : index
      %16 = vector.load %arg6[%c0_12, %c0_13] : memref<2x128xf32, #tpu.memory_space<vmem>>, vector<2x128xf32>
      tpu.vector_store %arg6[%c0_12, %c0_13], %15 {strides = array<i32>} : memref<2x128xf32, #tpu.memory_space<vmem>>, vector<2x128xf32>,
    } else {
    }
    %c0 = arith.constant 0 : index
    %c0_1 = arith.constant 0 : index
    %3 = vector.load %arg6[%c0, %c0_1] : memref<2x128xf32, #tpu.memory_space<vmem>>, vector<2x128xf32>
    %c0_2 = arith.constant 0 : index
    %c0_3 = arith.constant 0 : index
    %4 = vector.load %arg2[%c0_2, %c0_3] : memref<2x768xf32, #tpu.memory_space<vmem>>, vector<2x768xf32>
    %5 = arith.truncf %4 : vector<2x768xf32> to vector<2x768xbf16>
    %c0_4 = arith.constant 0 : index
    %c0_5 = arith.constant 0 : index
    %6 = vector.load %arg3[%c0_4, %c0_5] : memref<768x128xbf16, #tpu.memory_space<vmem>>, vector<768x128xbf16>
    %cst = arith.constant dense<0.000000e+00> : vector<2x128xf32>
    %7 = tpu.matmul %5, %6, %cst {dimension_numbers = #tpu.dot_dimension_numbers<[1], [0], [0], [1], [0, 0, 1, 1], [], []>} : vector<2x768xbf16>, vector<768x128xbf16>, vector<2x128xf32> -> vector<2x128xf32>
    %8 = arith.addf %3, %7 : vector<2x128xf32>
    %c0_6 = arith.constant 0 : index
    %c0_7 = arith.constant 0 : index
    %9 = vector.load %arg6[%c0_6, %c0_7] : memref<2x128xf32, #tpu.memory_space<vmem>>, vector<2x128xf32>
    tpu.vector_store %arg6[%c0_6, %c0_7], %8 {strides = array<i32>} : memref<2x128xf32, #tpu.memory_space<vmem>>, vector<2x128xf32>,
    %c0_i32_8 = arith.constant 0 : i32
    %10 = arith.cmpi eq, %arg1, %c0_i32_8 : i32
    %11 = arith.extui %10 : i1 to i32
    %c0_i32_9 = arith.constant 0 : i32
    %12 = arith.cmpi ne, %11, %c0_i32_9 : i32
    scf.if %12 {
      %c0_10 = arith.constant 0 : index
      %c0_11 = arith.constant 0 : index
      %13 = vector.load %arg6[%c0_10, %c0_11] : memref<2x128xf32, #tpu.memory_space<vmem>>, vector<2x128xf32>
      %c0_12 = arith.constant 0 : index
      %c0_13 = arith.constant 0 : index
      %14 = vector.load %arg5[%c0_12, %c0_13] : memref<2x128xf32, #tpu.memory_space<vmem>>, vector<2x128xf32>
      tpu.vector_store %arg5[%c0_12, %c0_13], %13 {strides = array<i32>} : memref<2x128xf32, #tpu.memory_space<vmem>>, vector<2x128xf32>,
    } else {
    }
    return
  }
  func.func @transform_0(%arg0: i32, %arg1: i32) -> (i32, i32) {
    %c0_i32 = arith.constant 0 : i32
    return %arg0, %arg1 : i32, i32
  }
  func.func @transform_1(%arg0: i32, %arg1: i32) -> (i32, i32) {
    %c0_i32 = arith.constant 0 : i32
    %c0_i32_0 = arith.constant 0 : i32
    return %arg1, %c0_i32 : i32, i32
  }
  func.func @transform_2(%arg0: i32, %arg1: i32) -> (i32, i32) {
    %c0_i32 = arith.constant 0 : i32
    %c0_i32_0 = arith.constant 0 : i32
    %c0_i32_1 = arith.constant 0 : i32
    return %c0_i32, %c0_i32_0 : i32, i32
  }
  func.func @transform_3(%arg0: i32, %arg1: i32) -> (i32, i32) {
    %c0_i32 = arith.constant 0 : i32
    %c0_i32_0 = arith.constant 0 : i32
    return %arg0, %c0_i32 : i32, i32
  }
}

module attributes {stable_mosaic.version = 11 : i64} {
  func.func @_stats_prod_kernel(%arg0: i32, %arg1: memref<2x128xf32, #tpu.memory_space<vmem>>, %arg2: memref<2x128xf32, #tpu.memory_space<vmem>>, %arg3: memref<1x128xf32, #tpu.memory_space<vmem>>, %arg4: memref<1x128xf32, #tpu.memory_space<vmem>>, %arg5: memref<1x1xf32, #tpu.memory_space<vmem>>, %arg6: memref<1x1xf32, #tpu.memory_space<vmem>>, %arg7: memref<2x2xf32, #tpu.memory_space<vmem>>) attributes {dimension_semantics = [#tpu.dimension_semantics<arbitrary>], iteration_bounds = array<i64: 1>, scalar_prefetch = 0 : i64, scratch_operands = 0 : i64, tpu.core_type = #tpu.core_type<tc>, window_params = [{pipeline_mode = #tpu.pipeline_mode<synchronous>, transform_indices = @transform_0, window_bounds = array<i64: 2, 128>}, {pipeline_mode = #tpu.pipeline_mode<synchronous>, transform_indices = @transform_1, window_bounds = array<i64: 2, 128>}, {pipeline_mode = #tpu.pipeline_mode<synchronous>, transform_indices = @transform_2, window_bounds = array<i64: 1, 128>}, {pipeline_mode = #tpu.pipeline_mode<synchronous>, transform_indices = @transform_3, window_bounds = array<i64: 1, 128>}, {pipeline_mode = #tpu.pipeline_mode<synchronous>, transform_indices = @transform_4, window_bounds = array<i64: 1, 1>}, {pipeline_mode = #tpu.pipeline_mode<synchronous>, transform_indices = @transform_5, window_bounds = array<i64: 1, 1>}, {pipeline_mode = #tpu.pipeline_mode<synchronous>, transform_indices = @transform_6, window_bounds = array<i64: 2, 2>}]} {
    %c0 = arith.constant 0 : index
    %c0_0 = arith.constant 0 : index
    %0 = vector.load %arg1[%c0, %c0_0] : memref<2x128xf32, #tpu.memory_space<vmem>>, vector<2x128xf32>
    %cst = arith.constant dense<0.000000e+00> : vector<128xf32>
    %1 = vector.multi_reduction <add>, %0, %cst [0] : vector<2x128xf32> to vector<128xf32>
    %2 = vector.shape_cast %1 : vector<128xf32> to vector<1x128xf32>
    %cst_1 = arith.constant 5.000000e-01 : f32
    %3 = vector.broadcast %cst_1 : f32 to vector<1x128xf32>
    %4 = arith.mulf %2, %3 : vector<1x128xf32>
    %c0_2 = arith.constant 0 : index
    %c0_3 = arith.constant 0 : index
    %5 = vector.load %arg3[%c0_2, %c0_3] : memref<1x128xf32, #tpu.memory_space<vmem>>, vector<1x128xf32>
    tpu.vector_store %arg3[%c0_2, %c0_3], %4 {strides = array<i32>} : memref<1x128xf32, #tpu.memory_space<vmem>>, vector<1x128xf32>,
    %6 = tpu.iota {dimensions = array<i32: 1>} : vector<2x128xi32>
    %cst_4 = arith.constant dense<0.000000e+00> : vector<2xf32>
    %7 = vector.multi_reduction <add>, %0, %cst_4 [1] : vector<2x128xf32> to vector<2xf32>
    %8 = vector.shape_cast %7 : vector<2xf32> to vector<2x1xf32>
    %cst_5 = arith.constant 3.125000e-02 : f32
    %9 = vector.broadcast %cst_5 : f32 to vector<2x1xf32>
    %10 = arith.mulf %8, %9 : vector<2x1xf32>
    %c32_i32 = arith.constant 32 : i32
    %11 = vector.broadcast %c32_i32 : i32 to vector<2x128xi32>
    %12 = arith.cmpi slt, %6, %11 : vector<2x128xi32>
    %13 = vector.broadcast %10 : vector<2x1xf32> to vector<2x128xf32>
    %14 = arith.subf %0, %13 : vector<2x128xf32>
    %cst_6 = arith.constant 0.000000e+00 : f32
    %15 = vector.broadcast %cst_6 : f32 to vector<2x128xf32>
    %16 = arith.select %12, %14, %15 : vector<2x128xi1>, vector<2x128xf32>
    %cst_7 = arith.constant dense<0.000000e+00> : vector<2x2xf32>
    %17 = tpu.matmul %16, %16, %cst_7 {dimension_numbers = #tpu.dot_dimension_numbers<[1], [1], [0], [0], [0, 0, 1, 0], [], []>} : vector<2x128xf32>, vector<2x128xf32>, vector<2x2xf32> -> vector<2x2xf32>
    %cst_8 = arith.constant 0.0322580636 : f32
    %18 = vector.broadcast %cst_8 : f32 to vector<2x2xf32>
    %19 = arith.mulf %18, %17 : vector<2x2xf32>
    %20 = arith.mulf %16, %16 : vector<2x128xf32>
    %cst_9 = arith.constant dense<0.000000e+00> : vector<2xf32>
    %21 = vector.multi_reduction <add>, %20, %cst_9 [1] : vector<2x128xf32> to vector<2xf32>
    %22 = vector.shape_cast %21 : vector<2xf32> to vector<2x1xf32>
    %cst_10 = arith.constant dense<0.000000e+00> : vector<1xf32>
    %23 = vector.multi_reduction <add>, %22, %cst_10 [0] : vector<2x1xf32> to vector<1xf32>
    %24 = vector.shape_cast %23 : vector<1xf32> to vector<1x1xf32>
    %cst_11 = arith.constant 0.0322580636 : f32
    %25 = vector.broadcast %cst_11 : f32 to vector<1x1xf32>
    %26 = arith.mulf %25, %24 : vector<1x1xf32>
    %c0_12 = arith.constant 0 : index
    %c0_13 = arith.constant 0 : index
    %27 = vector.load %arg5[%c0_12, %c0_13] : memref<1x1xf32, #tpu.memory_space<vmem>>, vector<1x1xf32>
    tpu.vector_store %arg5[%c0_12, %c0_13], %26 {strides = array<i32>} : memref<1x1xf32, #tpu.memory_space<vmem>>, vector<1x1xf32>,
    %c0_14 = arith.constant 0 : index
    %c0_15 = arith.constant 0 : index
    %28 = vector.load %arg2[%c0_14, %c0_15] : memref<2x128xf32, #tpu.memory_space<vmem>>, vector<2x128xf32>
    %cst_16 = arith.constant dense<0.000000e+00> : vector<128xf32>
    %29 = vector.multi_reduction <add>, %28, %cst_16 [0] : vector<2x128xf32> to vector<128xf32>
    %30 = vector.shape_cast %29 : vector<128xf32> to vector<1x128xf32>
    %cst_17 = arith.constant 5.000000e-01 : f32
    %31 = vector.broadcast %cst_17 : f32 to vector<1x128xf32>
    %32 = arith.mulf %30, %31 : vector<1x128xf32>
    %c0_18 = arith.constant 0 : index
    %c0_19 = arith.constant 0 : index
    %33 = vector.load %arg4[%c0_18, %c0_19] : memref<1x128xf32, #tpu.memory_space<vmem>>, vector<1x128xf32>
    tpu.vector_store %arg4[%c0_18, %c0_19], %32 {strides = array<i32>} : memref<1x128xf32, #tpu.memory_space<vmem>>, vector<1x128xf32>,
    %34 = tpu.iota {dimensions = array<i32: 1>} : vector<2x128xi32>
    %cst_20 = arith.constant dense<0.000000e+00> : vector<2xf32>
    %35 = vector.multi_reduction <add>, %28, %cst_20 [1] : vector<2x128xf32> to vector<2xf32>
    %36 = vector.shape_cast %35 : vector<2xf32> to vector<2x1xf32>
    %cst_21 = arith.constant 3.125000e-02 : f32
    %37 = vector.broadcast %cst_21 : f32 to vector<2x1xf32>
    %38 = arith.mulf %36, %37 : vector<2x1xf32>
    %c32_i32_22 = arith.constant 32 : i32
    %39 = vector.broadcast %c32_i32_22 : i32 to vector<2x128xi32>
    %40 = arith.cmpi slt, %34, %39 : vector<2x128xi32>
    %41 = vector.broadcast %38 : vector<2x1xf32> to vector<2x128xf32>
    %42 = arith.subf %28, %41 : vector<2x128xf32>
    %cst_23 = arith.constant 0.000000e+00 : f32
    %43 = vector.broadcast %cst_23 : f32 to vector<2x128xf32>
    %44 = arith.select %40, %42, %43 : vector<2x128xi1>, vector<2x128xf32>
    %cst_24 = arith.constant dense<0.000000e+00> : vector<2x2xf32>
    %45 = tpu.matmul %44, %44, %cst_24 {dimension_numbers = #tpu.dot_dimension_numbers<[1], [1], [0], [0], [0, 0, 1, 0], [], []>} : vector<2x128xf32>, vector<2x128xf32>, vector<2x2xf32> -> vector<2x2xf32>
    %cst_25 = arith.constant 0.0322580636 : f32
    %46 = vector.broadcast %cst_25 : f32 to vector<2x2xf32>
    %47 = arith.mulf %46, %45 : vector<2x2xf32>
    %48 = arith.mulf %44, %44 : vector<2x128xf32>
    %cst_26 = arith.constant dense<0.000000e+00> : vector<2xf32>
    %49 = vector.multi_reduction <add>, %48, %cst_26 [1] : vector<2x128xf32> to vector<2xf32>
    %50 = vector.shape_cast %49 : vector<2xf32> to vector<2x1xf32>
    %cst_27 = arith.constant dense<0.000000e+00> : vector<1xf32>
    %51 = vector.multi_reduction <add>, %50, %cst_27 [0] : vector<2x1xf32> to vector<1xf32>
    %52 = vector.shape_cast %51 : vector<1xf32> to vector<1x1xf32>
    %cst_28 = arith.constant 0.0322580636 : f32
    %53 = vector.broadcast %cst_28 : f32 to vector<1x1xf32>
    %54 = arith.mulf %53, %52 : vector<1x1xf32>
    %c0_29 = arith.constant 0 : index
    %c0_30 = arith.constant 0 : index
    %55 = vector.load %arg6[%c0_29, %c0_30] : memref<1x1xf32, #tpu.memory_space<vmem>>, vector<1x1xf32>
    tpu.vector_store %arg6[%c0_29, %c0_30], %54 {strides = array<i32>} : memref<1x1xf32, #tpu.memory_space<vmem>>, vector<1x1xf32>,
    %cst_31 = arith.constant dense<0.000000e+00> : vector<2x2xf32>
    %56 = tpu.matmul %19, %47, %cst_31 {dimension_numbers = #tpu.dot_dimension_numbers<[1], [0], [0], [1], [0, 0, 1, 1], [], []>} : vector<2x2xf32>, vector<2x2xf32>, vector<2x2xf32> -> vector<2x2xf32>
    %c0_32 = arith.constant 0 : index
    %c0_33 = arith.constant 0 : index
    %57 = vector.load %arg7[%c0_32, %c0_33] : memref<2x2xf32, #tpu.memory_space<vmem>>, vector<2x2xf32>
    tpu.vector_store %arg7[%c0_32, %c0_33], %56 {strides = array<i32>} : memref<2x2xf32, #tpu.memory_space<vmem>>, vector<2x2xf32>,
    return
  }
  func.func @transform_0(%arg0: i32) -> (i32, i32) {
    %c0_i32 = arith.constant 0 : i32
    %c0_i32_0 = arith.constant 0 : i32
    %c0_i32_1 = arith.constant 0 : i32
    return %c0_i32, %c0_i32_0 : i32, i32
  }
  func.func @transform_1(%arg0: i32) -> (i32, i32) {
    %c0_i32 = arith.constant 0 : i32
    %c0_i32_0 = arith.constant 0 : i32
    %c0_i32_1 = arith.constant 0 : i32
    return %c0_i32, %c0_i32_0 : i32, i32
  }
  func.func @transform_2(%arg0: i32) -> (i32, i32) {
    %c0_i32 = arith.constant 0 : i32
    %c0_i32_0 = arith.constant 0 : i32
    %c0_i32_1 = arith.constant 0 : i32
    return %c0_i32, %c0_i32_0 : i32, i32
  }
  func.func @transform_3(%arg0: i32) -> (i32, i32) {
    %c0_i32 = arith.constant 0 : i32
    %c0_i32_0 = arith.constant 0 : i32
    %c0_i32_1 = arith.constant 0 : i32
    return %c0_i32, %c0_i32_0 : i32, i32
  }
  func.func @transform_4(%arg0: i32) -> (i32, i32) {
    %c0_i32 = arith.constant 0 : i32
    %c0_i32_0 = arith.constant 0 : i32
    %c0_i32_1 = arith.constant 0 : i32
    return %c0_i32, %c0_i32_0 : i32, i32
  }
  func.func @transform_5(%arg0: i32) -> (i32, i32) {
    %c0_i32 = arith.constant 0 : i32
    %c0_i32_0 = arith.constant 0 : i32
    %c0_i32_1 = arith.constant 0 : i32
    return %c0_i32, %c0_i32_0 : i32, i32
  }
  func.func @transform_6(%arg0: i32) -> (i32, i32) {
    %c0_i32 = arith.constant 0 : i32
    %c0_i32_0 = arith.constant 0 : i32
    %c0_i32_1 = arith.constant 0 : i32
    return %c0_i32, %c0_i32_0 : i32, i32
  }
}

</mosaic_0001>

<bundles_post_ra>
// kernel: frechet_inception_distance.5
= control target key start
LH: loop header
LB: loop body
LE: loop exit
PB: predicated region body
PF: predicated region fallthrough
CT: control target
= control target key end

     0   :  { %12 = vsyncpa [#allocation3], 0  ;;  %vm19_vm0 = vcmask 1041408   ;;  %s485_s0 = inlined_call_operand.vmem [shape: f32[2,128], index: 0, kind: input, shape index: {}]   ;;  %s486_s1 = inlined_call_operand.vmem [shape: f32[2,128], index: 1, kind: input, shape index: {}]   ;;  %s487_s2 = inlined_call_operand.vmem [shape: f32[1,128], index: 2, kind: output, shape index: {0}]   ;;  %s488_s3 = inlined_call_operand.vmem [shape: f32[1,128], index: 3, kind: output, shape index: {1}]   ;;  %s489_s4 = inlined_call_operand.hbm [shape: f32[1,1], index: 4, kind: output, shape index: {2}]   ;;  %s490_s5 = inlined_call_operand.hbm [shape: f32[1,1], index: 5, kind: output, shape index: {3}]   ;;  %s491_s6 = inlined_call_operand.vmem [shape: f32[2,2], index: 6, kind: output, shape index: {4}]  }
   0x1   :  { %v122_v0 = vld [vmem:[%s486_s1] sm:$0x3] }
   0x2   :  { %v18_v1 = vld [vmem:[%s485_s0] sm:$0x3]  ;;  %v123_v2 = vsel %vm19_vm0, %v122_v0, 0.0 }
   0x3   :  { %v20_v3 = vsel %vm19_vm0, %v18_v1, 0.0 }
   0x4   :  { %13 = vsyncpa [#allocation5], 0  ;;  %132 = vadd.xlane.f32.xlu0 %v123_v2  ;;  %v124_v4 = vrot.slane %v123_v2, 4  ;;  %v21_v5 = vrot.slane %v20_v3, 4  ;;  %v415_v18 = vmov 0.0   ;;  %vm416_vm1 = vmmov 0  }
   0x5   :  { %357 = vmatprep.subr.mxu1 %v415_v18  ;;  %352 = vmatprep.subr.mxu0 %v415_v18  ;;  %v29_v19 = vlaneseq  ;;  %vm120_vm3 = vcmask 0   ;;  %vm221_vm4 = vcmask 15360   ;;  %s418_s27 = smov [#allocation4]  }
   0x6   :  { %v125_v6 = vadd.f32 %v124_v4, %v123_v2  ;;  %v22_v7 = vadd.f32 %v21_v5, %v20_v3  ;;  %359 = vmatprep.mubr.msk.f32.mxu1 %vm416_vm1, %v415_v18  ;;  %354 = vmatprep.mubr.msk.f32.mxu0 %vm416_vm1, %v415_v18  ;;  %s320_s28 = sshll.u32 %s418_s27, 4  ;;  %s321_s28 = int_to_ptr.vmem [resolvable:$true] %s320_s28 }
   0x7   :  { %v30_v20 = vand.u32 127, %v29_v19 }
   0x8   :  { %v126_v8 = vrot.slane %v125_v6, 2  ;;  %31 = vadd.xlane.f32.xlu0 %v20_v3  ;;  %v23_v9 = vrot.slane %v22_v7, 2 }
   0x9   :  { %vm34_vm2 = vcmp.lt.s32.totalorder %v30_v20, 32 }
   0xa   :  { %v127_v10 = vadd.f32 %v126_v8, %v125_v6  ;;  %v24_v11 = vadd.f32 %v23_v9, %v22_v7 }
   0xc   :  { %v128_v12 = vrot.slane %v127_v10, 1  ;;  %v25_v13 = vrot.slane %v24_v11, 1 }
   0xe   :  { %v129_v14 = vadd.f32 %v128_v12, %v127_v10  ;;  %v26_v15 = vadd.f32 %v25_v13, %v24_v11 }
  0x10   :  { %v130_v16 = vmul.f32 0.5, %v129_v14  ;;  %v27_v17 = vmul.f32 0.5, %v26_v15 }
  0x12   :  { %131 = vst [vmem:[%s488_s3] sm:$0x1] %v130_v16  ;;  %28 = vst [vmem:[%s487_s2] sm:$0x1] %v27_v17  ;;  %s417_s2 = smov [#allocation2]  }
  0x13   :  { %s310_s3 = sshll.u32 %s417_s2, 4  ;;  %s311_s3 = int_to_ptr.vmem [resolvable:$true] %s310_s3 }
  0x14   :  { %s371_s29 = scalar_lea.vmem %s311_s3, 16  ;;  %s375_s30 = scalar_lea.vmem %s311_s3, 32 }
  0x15   :  { %p372_p0 = scmp.ne.s32.totalorder %s311_s3, %s371_s29  ;;  %p376_p1 = scmp.lt.s32.totalorder %s311_s3, %s311_s3 }
  0x16   :  { %p377_p2 = scmp.lt.s32.totalorder %s375_s30, %s371_s29 }
  0x18   :  { %p378_p3 = por %p377_p2, %p376_p1 }
  0x1a   :  { %p379_p4 = pnand %p378_p3, %p372_p0 }
  0x8d   :  { %v133_v21 = vpop.xlane.xlu0 %132 }
  0x8e   :  { %v134_v22 = vmul.f32 0.03125, %v133_v21 }
  0x90   :  { %v135_v23 = vsub.f32 %v122_v0, %v134_v22 }
  0x91   :  { %v32_v24 = vpop.xlane.xlu0 %31 }
  0x92   :  { %v33_v25 = vmul.f32 0.03125, %v32_v24  ;;  %358 = vmatpush3.xpose.msk.msra.mxu1 %vm34_vm2, %v135_v23  ;;  %v136_v28 = vsel %vm34_vm2, %v135_v23, 0.0 }
  0x93   :  { %v208_v31 = vmul.f32 %v136_v28, %v136_v28 }
  0x94   :  { %v35_v26 = vsub.f32 %v18_v1, %v33_v25 }
  0x95   :  { %360 = vmatmul.mubr.msk.f32.vlgmr.msra.gmra.mxu1 %vm34_vm2, %v135_v23  ;;  %v209_v32 = vsel %vm19_vm0, %v208_v31, 0.0 }
  0x96   :  { %353 = vmatpush3.xpose.msk.msra.mxu0 %vm34_vm2, %v35_v26  ;;  %v36_v27 = vsel %vm34_vm2, %v35_v26, 0.0 }
  0x97   :  { %v108_v29 = vmul.f32 %v36_v27, %v36_v27  ;;  %362 = vmatprep.subr.mxu0 %v415_v18 }
  0x99   :  { %355 = vmatmul.mubr.msk.f32.vlgmr.msra.gmra.mxu0 %vm34_vm2, %v35_v26  ;;  %v109_v30 = vsel %vm19_vm0, %v108_v29, 0.0 }
  0x9a   :  { %110 = vadd.xlane.f32.xlu1 %v109_v30  ;;  %364 = vmatprep.mubr.msk.f32.mxu0 %vm416_vm1, %v415_v18 }
  0x9e   :  { %210 = vadd.xlane.f32.xlu1 %v209_v32 }
 0x123   :  { %v111_v33 = vpop.xlane.xlu1 %110 }
 0x124   :  { %v112_v34 = vsel %vm19_vm0, %v111_v33, 0.0 }
 0x125   :  { %v113_v35 = vrot.slane %v112_v34, 4 }
 0x127   :  { %v114_v36 = vadd.f32 %v113_v35, %v112_v34  ;;  %v211_v37 = vpop.xlane.xlu1 %210 }
 0x128   :  { %v212_v38 = vsel %vm19_vm0, %v211_v37, 0.0 }
 0x129   :  { %v115_v39 = vrot.slane %v114_v36, 2  ;;  %v213_v40 = vrot.slane %v212_v38, 4 }
 0x12b   :  { %v116_v41 = vadd.f32 %v115_v39, %v114_v36  ;;  %v214_v42 = vadd.f32 %v213_v40, %v212_v38 }
 0x12d   :  { %v215_v43 = vrot.slane %v214_v42, 2  ;;  %v117_v44 = vrot.slane %v116_v41, 1 }
 0x12f   :  { %v216_v45 = vadd.f32 %v215_v43, %v214_v42  ;;  %v118_v46 = vadd.f32 %v117_v44, %v116_v41 }
 0x131   :  { %v217_v47 = vrot.slane %v216_v45, 1  ;;  %v119_v48 = vmul.f32 0.032258064, %v118_v46 }
 0x133   :  { %121 = vst.msk [vmem:[#allocation2] sm:$0x1] %vm120_vm3, %v119_v48  ;;  %v218_v49 = vadd.f32 %v217_v47, %v216_v45 }
 0x135   :  { %v219_v50 = vmul.f32 0.032258064, %v218_v49 }
 0x137   :  { %220 = vst.msk [vmem:[#allocation4] sm:$0x1] %vm120_vm3, %v219_v50 }
 0x155   :  { %v203_v51 = vpop.f32.mrf.mxu1 }
 0x156   :  { %v207_v52 = vmul.f32 0.032258064, %v203_v51 }
 0x157   :  { %v361_v53 = vpop.f32.mrf.mxu1 }
 0x158   :  { %363 = vmatpush3.msk.msra.mxu0 %vm19_vm0, %v207_v52 }
 0x159   :  { %v103_v54 = vpop.f32.mrf.mxu0 }
 0x15a   :  { %v107_v55 = vmul.f32 0.032258064, %v103_v54 }
 0x15b   :  { %v356_v56 = vpop.f32.mrf.mxu0 }
 0x15c   :  { %365 = vmatmul.mubr.msk.f32.vlgmr.msra.gmra.mxu0 %vm221_vm4, %v107_v55 }
 0x15d   :  { %382 = shalt.err (!%p379_p4)
}
 0x15e   :  { %313 = dma.vmem_to_hbm [thread:$0]  %s311_s3, 16, %s489_s4, [#allocation3]  }
 0x15f   :  { %s391_s9 = scalar_lea.vmem %s321_s28, 16  ;;  %s395_s10 = scalar_lea.vmem %s321_s28, 32 }
 0x160   :  { %p392_p5 = scmp.ne.s32.totalorder %s321_s28, %s391_s9  ;;  %p396_p6 = scmp.lt.s32.totalorder %s321_s28, %s321_s28 }
 0x161   :  { %p397_p7 = scmp.lt.s32.totalorder %s395_s10, %s391_s9 }
 0x163   :  { %p398_p8 = por %p397_p7, %p396_p6 }
 0x165   :  { %p399_p9 = pnand %p398_p8, %p392_p5 }
 0x167   :  { %402 = shalt.err (!%p399_p9)
}
 0x168   :  { %323 = dma.vmem_to_hbm [thread:$0]  %s321_s28, 16, %s490_s5, [#allocation5]   ;;  %vm298_vm5 = vcmask 9216  }
 0x21c   :  { %v294_v57 = vpop.f32.mrf.mxu0 }
 0x21d   :  { %299 = vst.msk [vmem:[%s491_s6] sm:$0x3] %vm298_vm5, %v294_v57 }
 0x21e   :  { %v366_v58 = vpop.f32.mrf.mxu0 }
 0x21f   :  { %411 = dma.done.wait [#allocation3], 16  }
 0x220   :  { %412 = vsyncadd [#allocation3], 4294967280 }
 0x221   :  { %413 = dma.done.wait [#allocation5], 16  }
 0x222   :  { %414 = vsyncadd [#allocation5], 4294967280 }
 0x223   :  { %338 = vsyncpa [#allocation3], 1 }
 0x224   :  { %339 = vsyncpa [#allocation5], 1 }

// kernel: frechet_inception_distance.3
= control target key start
LH: loop header
LB: loop body
LE: loop exit
PB: predicated region body
PF: predicated region fallthrough
CT: control target
= control target key end

     0   :  { %v750_v22 = vmov 1983009808   ;;  %v36_v24 = vlaneseq  ;;  %s927_s1 = inlined_call_operand.vmem [shape: bf16[768,128], index: 1, kind: input, shape index: {}]   ;;  %s928_s0 = inlined_call_operand.vmem [shape: f32[2,768], index: 0, kind: input, shape index: {}]   ;;  %s929_s2 = inlined_call_operand.vmem [shape: f32[1,128], index: 2, kind: input, shape index: {}]   ;;  %s930_s3 = inlined_call_operand.vmem [shape: f32[2,128], index: 3, kind: output, shape index: {}]  }
   0x1   :  { %v701_v0 = vld [vmem:[%s927_s1 + $0x78] sm:$0xff]   ;;  %v705_v4 = vld [vmem:[%s927_s1 + $0x70] sm:$0xff]   ;;  %v709_v8 = vld [vmem:[%s927_s1 + $0x68] sm:$0xff]   ;;  %v34_v23 = vunpack.c.l.s4 %v750_v22 }
   0x2   :  { %v702_v1 = vld [vmem:[%s927_s1 + $0xf8] sm:$0xff]   ;;  %634 = vmatprep.subr.bf16.mxu0 %v701_v0  ;;  %v706_v5 = vld [vmem:[%s927_s1 + $0xf0] sm:$0xff]   ;;  %v710_v9 = vld [vmem:[%s927_s1 + $0xe8] sm:$0xff]   ;;  %v37_v30 = vshrl.u32 %v36_v24, 7 }
   0x3   :  { %v703_v2 = vld [vmem:[%s927_s1 + $0x38] sm:$0xff]   ;;  %656 = vmatprep.subr.bf16.mxu1 %v702_v1  ;;  %v707_v6 = vld [vmem:[%s927_s1 + $0x30] sm:$0xff]   ;;  %v711_v10 = vld [vmem:[%s927_s1 + $0x28] sm:$0xff]   ;;  %v35_v29 = vunpack.c.0.s8 %v34_v23 }
   0x4   :  { %v704_v3 = vld [vmem:[%s927_s1 + $0xb8] sm:$0xff]   ;;  %635 = vmatpush3.bf16.msra.mxu0 %v703_v2  ;;  %v708_v7 = vld [vmem:[%s927_s1 + $0xb0] sm:$0xff]   ;;  %v712_v11 = vld [vmem:[%s927_s1 + $0xa8] sm:$0xff]  }
   0x5   :  { %657 = vmatpush3.bf16.msra.mxu1 %v704_v3  ;;  %636 = vmatprep.subr.bf16.mxu0 %v705_v4  ;;  %v713_v12 = vld [vmem:[%s927_s1 + $0x60] sm:$0xff]   ;;  %v717_v16 = vld [vmem:[%s927_s1 + $0x58] sm:$0xff]   ;;  %v721_v20 = vld [vmem:[%s927_s1 + $0x50] sm:$0xff]   ;;  %v38_v35 = vsub.s32 %v35_v29, %v37_v30 }
   0x6   :  { %658 = vmatprep.subr.bf16.mxu1 %v706_v5  ;;  %v714_v13 = vld [vmem:[%s927_s1 + $0xe0] sm:$0xff]   ;;  %v718_v17 = vld [vmem:[%s927_s1 + $0xd8] sm:$0xff]   ;;  %v722_v21 = vld [vmem:[%s927_s1 + $0xd0] sm:$0xff]  }
   0x7   :  { %v715_v14 = vld [vmem:[%s927_s1 + $0x20] sm:$0xff]   ;;  %v719_v18 = vld [vmem:[%s927_s1 + $0x18] sm:$0xff]   ;;  %v723_v25 = vld [vmem:[%s927_s1 + $0x10] sm:$0xff]  }
   0x8   :  { %637 = vmatpush3.bf16.msra.mxu0 %v707_v6  ;;  %v716_v15 = vld [vmem:[%s927_s1 + $0xa0] sm:$0xff]   ;;  %v720_v19 = vld [vmem:[%s927_s1 + $0x98] sm:$0xff]   ;;  %v724_v26 = vld [vmem:[%s927_s1 + $0x90] sm:$0xff]  }
   0x9   :  { %659 = vmatpush3.bf16.msra.mxu1 %v708_v7  ;;  %638 = vmatprep.subr.bf16.mxu0 %v709_v8  ;;  %v725_v27 = vld [vmem:[%s927_s1 + $0x48] sm:$0xff]   ;;  %v729_v33 = vld [vmem:[%s927_s1 + $0x40] sm:$0xff]   ;;  %v734_v41 = vld [vmem:[%s927_s1 + $0x178] sm:$0xff]  }
   0xa   :  { %660 = vmatprep.subr.bf16.mxu1 %v710_v9  ;;  %v726_v28 = vld [vmem:[%s927_s1 + $0xc8] sm:$0xff]   ;;  %v730_v34 = vld [vmem:[%s927_s1 + $0xc0] sm:$0xff]   ;;  %v735_v47 = vld [vmem:[%s927_s1 + $0x138] sm:$0xff]  }
   0xb   :  { %v727_v31 = vld [vmem:[%s927_s1 + $0x8] sm:$0xff]   ;;  %v731_v36 = vld [vmem:[%s927_s1] sm:$0xff]   ;;  %v736_v49 = vld [vmem:[%s927_s1 + $0x170] sm:$0xff]  }
   0xc   :  { %639 = vmatpush3.bf16.msra.mxu0 %v711_v10  ;;  %v728_v32 = vld [vmem:[%s927_s1 + $0x88] sm:$0xff]   ;;  %v732_v37 = vld [vmem:[%s927_s1 + $0x80] sm:$0xff]   ;;  %v737_v51 = vld [vmem:[%s927_s1 + $0x130] sm:$0xff]  }
   0xd   :  { %661 = vmatpush3.bf16.msra.mxu1 %v712_v11  ;;  %640 = vmatprep.subr.bf16.mxu0 %v713_v12  ;;  %v28_v38 = vld [vmem:[%s928_s0] sm:$0xff]  ;;  %v738_v52 = vld [vmem:[%s927_s1 + $0x168] sm:$0xff]   ;;  %v742_v58 = vld [vmem:[%s927_s1 + $0x158] sm:$0xff]  }
   0xe   :  { %662 = vmatprep.subr.bf16.mxu1 %v714_v13  ;;  %v39_v39 = vrot.slane %v28_v38, %v38_v35  ;;  %v32_v40 = vcombine.high %v28_v38, %v28_v38  ;;  %v739_v53 = vld [vmem:[%s927_s1 + $0x128] sm:$0xff]   ;;  %v740_v54 = vld [vmem:[%s927_s1 + $0x160] sm:$0xff]   ;;  %v743_v60 = vld [vmem:[%s927_s1 + $0x118] sm:$0xff]  }
   0xf   :  { %v585_v55 = vld.sshfl [vmem:[%s928_s0 + $0x8] sm:$0x33 pattern:$0x76325410]  ;;  %v741_v56 = vld [vmem:[%s927_s1 + $0x120] sm:$0xff]   ;;  %v744_v61 = vld [vmem:[%s927_s1 + $0x150] sm:$0xff]  }
  0x10   :  { %641 = vmatpush3.bf16.msra.mxu0 %v715_v14  ;;  %v47_v42 = vcombine.high %v39_v39, %v39_v39  ;;  %v46_v43 = vrot.slane %v32_v40, %v38_v35  ;;  %v63_v44 = vpack.c.bf16 %v39_v39, %v39_v39  ;;  %v56_v57 = vcombine.high %v585_v55, %v585_v55  ;;  %v745_v62 = vld [vmem:[%s927_s1 + $0x110] sm:$0xff]   ;;  %v746_v63 = vld [vmem:[%s927_s1 + $0x148] sm:$0xff]   ;;  %v748_v1 = vld [vmem:[%s927_s1 + $0x140] sm:$0xff]  }
  0x11   :  { %663 = vmatpush3.bf16.msra.mxu1 %v716_v15  ;;  %642 = vmatprep.subr.bf16.mxu0 %v717_v16  ;;  %v747_v0 = vld [vmem:[%s927_s1 + $0x108] sm:$0xff]   ;;  %v749_v2 = vld [vmem:[%s927_s1 + $0x100] sm:$0xff]   ;;  %v67_v3 = vpack.c.bf16 %v585_v55, %v585_v55 }
  0x12   :  { %664 = vmatprep.subr.bf16.mxu1 %v718_v17  ;;  %v64_v45 = vpack.c.bf16 %v47_v42, %v47_v42  ;;  %v48_v46 = vcombine.high %v46_v43, %v46_v43  ;;  %v65_v48 = vpack.c.bf16 %v46_v43, %v46_v43  ;;  %v68_v59 = vpack.c.bf16 %v56_v57, %v56_v57  ;;  %v584_v4 = vld [vmem:[%s929_s2] ss:$0 sm:$0xff] }
  0x13   :  { %26 = vst [vmem:[#allocation2] sm:$0x3] %v584_v4 }
  0x14   :  { %643 = vmatpush3.bf16.msra.mxu0 %v719_v18  ;;  %485 = vmatprep.mubr.bf16.mxu0 %v64_v45  ;;  %v66_v50 = vpack.c.bf16 %v48_v46, %v48_v46 }
  0x15   :  { %665 = vmatpush3.bf16.msra.mxu1 %v720_v19  ;;  %644 = vmatprep.subr.bf16.mxu0 %v721_v20 }
  0x16   :  { %666 = vmatprep.subr.bf16.mxu1 %v722_v21  ;;  %525 = vmatprep.mubr.bf16.mxu1 %v66_v50 }
  0x18   :  { %645 = vmatpush3.bf16.msra.mxu0 %v723_v25 }
  0x19   :  { %667 = vmatpush3.bf16.msra.mxu1 %v724_v26  ;;  %646 = vmatprep.subr.bf16.mxu0 %v725_v27 }
  0x1a   :  { %668 = vmatprep.subr.bf16.mxu1 %v726_v28  ;;  %v27_v19 = vld [vmem:[#allocation2] sm:$0x3] }
  0x1c   :  { %647 = vmatpush3.bf16.msra.mxu0 %v727_v31 }
  0x1d   :  { %669 = vmatpush3.bf16.msra.mxu1 %v728_v32  ;;  %648 = vmatprep.subr.bf16.mxu0 %v729_v33 }
  0x1e   :  { %670 = vmatprep.subr.bf16.mxu1 %v730_v34 }
  0x20   :  { %649 = vmatpush3.bf16.msra.mxu0 %v731_v36 }
  0x21   :  { %671 = vmatpush3.bf16.msra.mxu1 %v732_v37  ;;  %678 = vmatprep.subr.bf16.mxu0 %v734_v41 }
  0x23   :  { %486 = vmatmul.mubr.bf16.vlgmr.msra.gmra.mxu0 %v63_v44 }
  0x24   :  { %679 = vmatpush3.bf16.msra.mxu0 %v735_v47  ;;  %526 = vmatmul.mubr.bf16.vlgmr.msra.gmra.mxu1 %v65_v48 }
  0x25   :  { %680 = vmatprep.subr.bf16.mxu0 %v736_v49  ;;  %565 = vmatprep.mubr.bf16.mxu0 %v68_v59 }
  0x28   :  { %681 = vmatpush3.bf16.msra.mxu0 %v737_v51 }
  0x29   :  { %682 = vmatprep.subr.bf16.mxu0 %v738_v52 }
  0x2c   :  { %683 = vmatpush3.bf16.msra.mxu0 %v739_v53 }
  0x2d   :  { %684 = vmatprep.subr.bf16.mxu0 %v740_v54 }
  0x30   :  { %685 = vmatpush3.bf16.msra.mxu0 %v741_v56 }
  0x31   :  { %686 = vmatprep.subr.bf16.mxu0 %v742_v58 }
  0x34   :  { %687 = vmatpush3.bf16.msra.mxu0 %v743_v60 }
  0x35   :  { %688 = vmatprep.subr.bf16.mxu0 %v744_v61 }
  0x38   :  { %689 = vmatpush3.bf16.msra.mxu0 %v745_v62 }
  0x39   :  { %690 = vmatprep.subr.bf16.mxu0 %v746_v63 }
  0x3c   :  { %691 = vmatpush3.bf16.msra.mxu0 %v747_v0 }
  0x3d   :  { %692 = vmatprep.subr.bf16.mxu0 %v748_v1 }
  0x40   :  { %693 = vmatpush3.bf16.msra.mxu0 %v749_v2 }
  0x43   :  { %566 = vmatmul.mubr.bf16.vlgmr.msra.gmra.mxu0 %v67_v3 }
  0xe3   :  { %v650_v5 = vpop.f32.mrf.mxu0 }
  0xe4   :  { %v672_v6 = vpop.f32.mrf.mxu1 }
  0xe5   :  { %v651_v7 = vpop.f32.mrf.mxu0 }
  0xe6   :  { %v673_v8 = vpop.f32.mrf.mxu1  ;;  %v652_v13 = vadd.f32 %v651_v7, %v650_v5 }
  0xe7   :  { %v653_v9 = vpop.f32.mrf.mxu0  ;;  %v674_v14 = vadd.f32 %v673_v8, %v672_v6 }
  0xe8   :  { %v675_v11 = vpop.f32.mrf.mxu1 }
  0xe9   :  { %v654_v10 = vpop.f32.mrf.mxu0  ;;  %v528_v17 = vadd.f32 %v674_v14, %v652_v13 }
  0xea   :  { %v676_v12 = vpop.f32.mrf.mxu1 }
 0x103   :  { %v694_v15 = vpop.f32.mrf.mxu0 }
 0x105   :  { %v695_v16 = vpop.f32.mrf.mxu0 }
 0x106   :  { %v696_v18 = vadd.f32 %v695_v16, %v694_v15 }
 0x107   :  { %v697_v20 = vpop.f32.mrf.mxu0 }
 0x108   :  { %v568_v21 = vadd.f32 %v696_v18, %v528_v17 }
 0x109   :  { %v698_v22 = vpop.f32.mrf.mxu0 }
 0x10a   :  { %v573_v23 = vadd.f32 %v568_v21, %v27_v19 }
 0x10c   :  { %574 = vst [vmem:[#allocation2] sm:$0x3] %v573_v23 }
 0x113   :  { %v578_v24 = vld [vmem:[#allocation2] sm:$0x3] }
 0x114   :  { %579 = vst [vmem:[%s930_s3] sm:$0x3] %v578_v24 }

</bundles_post_ra>
